<compile_context>
chip_gen: v5e
topology: v5e:2x2
jax: 0.10.0
libtpu: 0.0.40
codegen_flags: <defaults>
</compile_context>

<pallas_src>
import functools

import jax
import jax.numpy as jnp
from jax.experimental import pallas as pl
from jax.experimental.pallas import tpu as pltpu


def _lstm_head_kernel(x_ref, w1_ref, w23_ref, b_ref, out_ref, *, hidden):
    """All-rows, zero-state, single-step 2-layer LSTM cell + Linear.

    x_ref:   (N, I)     f32  -- one row per independent length-1 sequence
    w1_ref:  (I, 4H)    f32  -- layer-0 W_ih^T, cols [i|f|g|o], g pre-scaled by 2
    w23_ref: (2, H, 4H) f32  -- [0]: layer-1 W_ih^T (same packing)
                                [1]: Linear W^T, output lanes zero-padded to 4H
    b_ref:   (3, 4H)    f32  -- [b_ih+b_hh layer0, layer1, b_lin lane-padded]
    out_ref: (N, 4H)    f32  -- predictions live in lanes [0:O)
    """
    H = hidden
    b = b_ref[...]                                       # (3, 4H)

    def cell(gates):
        # One full-vreg sigmoid (EUP); tanh(g) recovered as 2*sigmoid(2g) - 1
        # (VPU fma).  Forget gate unused because c0 == 0, so c = i * g.
        s = jax.nn.sigmoid(gates)                        # [s(i), s(f), s(2g), s(o)]
        c = s[:, 0:H] * (2.0 * s[:, 2 * H:3 * H] - 1.0)  # i * tanh(g)
        return s[:, 3 * H:4 * H] * jnp.tanh(c)           # o * tanh(c)  -> (N, H)

    # Layer 0: fused-gates matmul (MXU, f32 acc) over all N rows at once.
    h1 = cell(jnp.dot(x_ref[...], w1_ref[...],
                      preferred_element_type=jnp.float32) + b[0:1, :])
    # Layer 1.
    h2 = cell(jnp.dot(h1, w23_ref[0],
                      preferred_element_type=jnp.float32) + b[1:2, :])
    # Linear (output lanes beyond O are exactly zero by construction).
    out_ref[...] = (jnp.dot(h2, w23_ref[1],
                            preferred_element_type=jnp.float32) + b[2:3, :])


def init_lstm_model_params(key, input_size, hidden, output_size):
    """PyTorch-style uniform(-1/sqrt(H), 1/sqrt(H)) init, PyTorch layout."""
    k = 1.0 / jnp.sqrt(jnp.float32(hidden))
    names_shapes = [
        ("w_ih_l0", (4 * hidden, input_size)),
        ("w_hh_l0", (4 * hidden, hidden)),
        ("b_ih_l0", (4 * hidden,)),
        ("b_hh_l0", (4 * hidden,)),
        ("w_ih_l1", (4 * hidden, hidden)),
        ("w_hh_l1", (4 * hidden, hidden)),
        ("b_ih_l1", (4 * hidden,)),
        ("b_hh_l1", (4 * hidden,)),
        ("w_lin", (output_size, hidden)),
        ("b_lin", (output_size,)),
    ]
    keys = jax.random.split(key, len(names_shapes))
    params = {}
    for sub, (name, shape) in zip(keys, names_shapes):
        params[name] = jax.random.uniform(sub, shape, jnp.float32, -k, k)
    return params


def prepare_lstm_params(params):
    """One-time glue, hoisted out of the forward path.

    Transposes, folds b_ih + b_hh, pre-scales the g gate block by 2 (for the
    tanh-from-sigmoid identity), zero-pads the Linear weights/bias to 4H lanes
    (lane-dense output), and merges arrays so the kernel takes 4 inputs.
    W_hh is dropped entirely (zero initial state).
    """
    H = params["w_hh_l0"].shape[1]
    O = params["w_lin"].shape[0]
    G = 4 * H
    f32 = jnp.float32

    def gate_prep(w_ih, b_ih, b_hh):
        wt = w_ih.T.astype(f32)                       # (in, 4H), cols [i|f|g|o]
        b = (b_ih + b_hh).astype(f32)                 # (4H,)
        # Pre-scale g so the kernel can use tanh(g) = 2*sigmoid(2g) - 1.
        wt = wt.at[:, 2 * H:3 * H].multiply(2.0)
        b = b.at[2 * H:3 * H].multiply(2.0)
        return wt, b

    w1, b1 = gate_prep(params["w_ih_l0"], params["b_ih_l0"], params["b_hh_l0"])
    w2, b2 = gate_prep(params["w_ih_l1"], params["b_ih_l1"], params["b_hh_l1"])

    # Layer-1 LSTM weights and Linear weights share K = H -> one (2, H, 4H) slab.
    wlin_pad = jnp.zeros((H, G), f32).at[:, :O].set(params["w_lin"].T.astype(f32))
    w23 = jnp.stack([w2, wlin_pad], axis=0)           # (2, H, 4H)

    # All biases in one (3, 4H) slab (Linear bias lane-padded with zeros).
    b_all = jnp.zeros((3, G), f32)
    b_all = b_all.at[0].set(b1).at[1].set(b2).at[2, :O].set(
        params["b_lin"].astype(f32))

    return {"w1": w1, "w23": w23, "b_all": b_all}


def lstm_model_forward(input_seq, w1, w23, b_all, *, out_features):
    """Faithful port of LSTMModel.forward. input_seq: (N, 1, input_size)."""
    N, T, I = input_seq.shape
    assert T == 1, "module's Linear(in=hidden) only admits per-row seq length 1"
    G = w1.shape[1]
    H = G // 4
    O = out_features

    # All N rows are independent single-step cells with zero state: push them
    # through the MXU in one call (same latency as one row), slice [-1] after.
    x = input_seq[:, 0, :].astype(jnp.float32)        # (N, I)

    flops = 2 * N * (I * G + H * G + H * G)
    transcendentals = N * (2 * G + 2 * H)             # 2 sigmoid vregs + 2 tanh(c)
    bytes_accessed = 4 * (x.size + w1.size + w23.size + b_all.size + N * G)

    vmem = pl.BlockSpec(memory_space=pltpu.MemorySpace.VMEM)
    out = pl.pallas_call(
        functools.partial(_lstm_head_kernel, hidden=H),
        out_shape=jax.ShapeDtypeStruct((N, G), jnp.float32),
        in_specs=[vmem] * 4,
        out_specs=vmem,
        cost_estimate=pl.CostEstimate(flops=flops,
                                      transcendentals=transcendentals,
                                      bytes_accessed=bytes_accessed),
    )(x, w1, w23, b_all)

    # predictions[-1]; meaningful output lanes are [0:O).
    return out[N - 1, :O]


def _reference_forward(input_seq, params):
    """Pure-JAX f32 reference of the PyTorch module (for the self-check)."""
    x = input_seq[:, 0, :].astype(jnp.float32)

    def cell(inp, w_ih, w_hh, b_ih, b_hh):
        H = w_hh.shape[1]
        gates = inp @ w_ih.T + (b_ih + b_hh)          # h0 = 0
        i = jax.nn.sigmoid(gates[:, 0:H])
        g = jnp.tanh(gates[:, 2 * H:3 * H])
        o = jax.nn.sigmoid(gates[:, 3 * H:4 * H])
        c = i * g                                     # c0 = 0
        return o * jnp.tanh(c)

    h1 = cell(x, params["w_ih_l0"], params["w_hh_l0"],
              params["b_ih_l0"], params["b_hh_l0"])
    h2 = cell(h1, params["w_ih_l1"], params["w_hh_l1"],
              params["b_ih_l1"], params["b_hh_l1"])
    preds = h2 @ params["w_lin"].T + params["b_lin"]
    return preds[-1]


if __name__ == "__main__":
    # N=8 "timesteps fed as batch", input_size=16, hidden=32, output=4
    N, INPUT, HIDDEN, OUTPUT = 8, 16, 32, 4

    root = jax.random.PRNGKey(0)
    k_param, k_x = jax.random.split(root)
    params = init_lstm_model_params(k_param, INPUT, HIDDEN, OUTPUT)
    input_seq = jax.random.normal(k_x, (N, 1, INPUT), jnp.float32)

    prepped = prepare_lstm_params(params)        # one-time, hoisted wrapper glue
    forward = jax.jit(functools.partial(lstm_model_forward, out_features=OUTPUT))

    out = forward(input_seq, prepped["w1"], prepped["w23"], prepped["b_all"])
    jax.block_until_ready(out)
    assert out.shape == (OUTPUT,)

    # Correctness self-check (all-f32 path; only transcendental approx differs).
    ref = _reference_forward(input_seq, params)
    max_err = float(jnp.max(jnp.abs(out - ref)))
    assert max_err < 2e-3, f"mismatch vs reference: {max_err}"

    print("KERNEL_OK")
</pallas_src>

<mosaic_0001>
module attributes {stable_mosaic.version = 11 : i64} {
  func.func @_lstm_head_kernel(%arg0: memref<8x16xf32, #tpu.memory_space<vmem>>, %arg1: memref<16x128xf32, #tpu.memory_space<vmem>>, %arg2: memref<2x32x128xf32, #tpu.memory_space<vmem>>, %arg3: memref<3x128xf32, #tpu.memory_space<vmem>>, %arg4: memref<8x128xf32, #tpu.memory_space<vmem>>) attributes {dimension_semantics = [], scalar_prefetch = 0 : i64, scratch_operands = 0 : i64, tpu.core_type = #tpu.core_type<tc>} {
    %c0 = arith.constant 0 : index
    %c0_0 = arith.constant 0 : index
    %0 = vector.load %arg3[%c0, %c0_0] : memref<3x128xf32, #tpu.memory_space<vmem>>, vector<3x128xf32>
    %c0_1 = arith.constant 0 : index
    %c0_2 = arith.constant 0 : index
    %1 = vector.load %arg0[%c0_1, %c0_2] : memref<8x16xf32, #tpu.memory_space<vmem>>, vector<8x16xf32>
    %c0_3 = arith.constant 0 : index
    %c0_4 = arith.constant 0 : index
    %2 = vector.load %arg1[%c0_3, %c0_4] : memref<16x128xf32, #tpu.memory_space<vmem>>, vector<16x128xf32>
    %cst = arith.constant dense<0.000000e+00> : vector<8x128xf32>
    %3 = tpu.matmul %1, %2, %cst {dimension_numbers = #tpu.dot_dimension_numbers<[1], [0], [0], [1], [0, 0, 1, 1], [], []>} : vector<8x16xf32>, vector<16x128xf32>, vector<8x128xf32> -> vector<8x128xf32>
    %4 = vector.extract_strided_slice %0 {offsets = [0, 0], sizes = [1, 128], strides = [1, 1]} : vector<3x128xf32> to vector<1x128xf32>
    %5 = vector.broadcast %4 : vector<1x128xf32> to vector<8x128xf32>
    %6 = arith.addf %3, %5 : vector<8x128xf32>
    %7 = arith.negf %6 : vector<8x128xf32>
    %8 = math.exp %7 : vector<8x128xf32>
    %cst_5 = arith.constant 1.000000e+00 : f32
    %9 = vector.broadcast %cst_5 : f32 to vector<8x128xf32>
    %10 = arith.addf %9, %8 : vector<8x128xf32>
    %11 = arith.divf %9, %10 : vector<8x128xf32>
    %12 = vector.extract_strided_slice %11 {offsets = [0, 0], sizes = [8, 32], strides = [1, 1]} : vector<8x128xf32> to vector<8x32xf32>
    %13 = vector.extract_strided_slice %11 {offsets = [0, 64], sizes = [8, 32], strides = [1, 1]} : vector<8x128xf32> to vector<8x32xf32>
    %cst_6 = arith.constant 2.000000e+00 : f32
    %14 = vector.broadcast %cst_6 : f32 to vector<8x32xf32>
    %15 = arith.mulf %14, %13 : vector<8x32xf32>
    %cst_7 = arith.constant 1.000000e+00 : f32
    %16 = vector.broadcast %cst_7 : f32 to vector<8x32xf32>
    %17 = arith.subf %15, %16 : vector<8x32xf32>
    %18 = arith.mulf %12, %17 : vector<8x32xf32>
    %19 = vector.extract_strided_slice %11 {offsets = [0, 96], sizes = [8, 32], strides = [1, 1]} : vector<8x128xf32> to vector<8x32xf32>
    %20 = math.tanh %18 : vector<8x32xf32>
    %21 = arith.mulf %19, %20 : vector<8x32xf32>
    %c0_8 = arith.constant 0 : index
    %c0_9 = arith.constant 0 : index
    %c0_10 = arith.constant 0 : index
    %22 = vector.load %arg2[%c0_8, %c0_9, %c0_10] : memref<2x32x128xf32, #tpu.memory_space<vmem>>, vector<1x32x128xf32>
    %23 = vector.shape_cast %22 : vector<1x32x128xf32> to vector<32x128xf32>
    %cst_11 = arith.constant dense<0.000000e+00> : vector<8x128xf32>
    %24 = tpu.matmul %21, %23, %cst_11 {dimension_numbers = #tpu.dot_dimension_numbers<[1], [0], [0], [1], [0, 0, 1, 1], [], []>} : vector<8x32xf32>, vector<32x128xf32>, vector<8x128xf32> -> vector<8x128xf32>
    %25 = vector.extract_strided_slice %0 {offsets = [1, 0], sizes = [1, 128], strides = [1, 1]} : vector<3x128xf32> to vector<1x128xf32>
    %26 = vector.broadcast %25 : vector<1x128xf32> to vector<8x128xf32>
    %27 = arith.addf %24, %26 : vector<8x128xf32>
    %28 = arith.negf %27 : vector<8x128xf32>
    %29 = math.exp %28 : vector<8x128xf32>
    %cst_12 = arith.constant 1.000000e+00 : f32
    %30 = vector.broadcast %cst_12 : f32 to vector<8x128xf32>
    %31 = arith.addf %30, %29 : vector<8x128xf32>
    %32 = arith.divf %30, %31 : vector<8x128xf32>
    %33 = vector.extract_strided_slice %32 {offsets = [0, 0], sizes = [8, 32], strides = [1, 1]} : vector<8x128xf32> to vector<8x32xf32>
    %34 = vector.extract_strided_slice %32 {offsets = [0, 64], sizes = [8, 32], strides = [1, 1]} : vector<8x128xf32> to vector<8x32xf32>
    %cst_13 = arith.constant 2.000000e+00 : f32
    %35 = vector.broadcast %cst_13 : f32 to vector<8x32xf32>
    %36 = arith.mulf %35, %34 : vector<8x32xf32>
    %cst_14 = arith.constant 1.000000e+00 : f32
    %37 = vector.broadcast %cst_14 : f32 to vector<8x32xf32>
    %38 = arith.subf %36, %37 : vector<8x32xf32>
    %39 = arith.mulf %33, %38 : vector<8x32xf32>
    %40 = vector.extract_strided_slice %32 {offsets = [0, 96], sizes = [8, 32], strides = [1, 1]} : vector<8x128xf32> to vector<8x32xf32>
    %41 = math.tanh %39 : vector<8x32xf32>
    %42 = arith.mulf %40, %41 : vector<8x32xf32>
    %c1 = arith.constant 1 : index
    %c0_15 = arith.constant 0 : index
    %c0_16 = arith.constant 0 : index
    %43 = vector.load %arg2[%c1, %c0_15, %c0_16] : memref<2x32x128xf32, #tpu.memory_space<vmem>>, vector<1x32x128xf32>
    %44 = vector.shape_cast %43 : vector<1x32x128xf32> to vector<32x128xf32>
    %cst_17 = arith.constant dense<0.000000e+00> : vector<8x128xf32>
    %45 = tpu.matmul %42, %44, %cst_17 {dimension_numbers = #tpu.dot_dimension_numbers<[1], [0], [0], [1], [0, 0, 1, 1], [], []>} : vector<8x32xf32>, vector<32x128xf32>, vector<8x128xf32> -> vector<8x128xf32>
    %46 = vector.extract_strided_slice %0 {offsets = [2, 0], sizes = [1, 128], strides = [1, 1]} : vector<3x128xf32> to vector<1x128xf32>
    %47 = vector.broadcast %46 : vector<1x128xf32> to vector<8x128xf32>
    %48 = arith.addf %45, %47 : vector<8x128xf32>
    %c0_18 = arith.constant 0 : index
    %c0_19 = arith.constant 0 : index
    %49 = vector.load %arg4[%c0_18, %c0_19] : memref<8x128xf32, #tpu.memory_space<vmem>>, vector<8x128xf32>
    tpu.vector_store %arg4[%c0_18, %c0_19], %48 {strides = array<i32>} : memref<8x128xf32, #tpu.memory_space<vmem>>, vector<8x128xf32>,
    return
  }
}

</mosaic_0001>

<bundles_post_ra>
// kernel: lstm_model_forward.1
= control target key start
LH: loop header
LB: loop body
LE: loop exit
PB: predicated region body
PF: predicated region fallthrough
CT: control target
= control target key end

     0   :  { %9 = vsyncpa [#allocation3], 0  ;;  %s431_s0 = inlined_call_operand.hbm [shape: f32[8,16], index: 0, kind: input, shape index: {}]   ;;  %s432_s1 = inlined_call_operand.hbm [shape: f32[16,128], index: 1, kind: input, shape index: {}]   ;;  %s433_s2 = inlined_call_operand.hbm [shape: f32[2,32,128], index: 2, kind: input, shape index: {}]   ;;  %s434_s3 = inlined_call_operand.hbm [shape: f32[3,128], index: 3, kind: input, shape index: {}]   ;;  %s435_s4 = inlined_call_operand.vmem [shape: f32[8,128], index: 4, kind: output, shape index: {}]  }
   0x1   :  { %10 = vsyncpa [#allocation5], 0  ;;  %s27_s17 = sshll.u32 %s432_s1, 4  ;;  %s28_s17 = int_to_ptr.hbm [resolvable:$true] %s27_s17 }
   0x2   :  { %11 = vsyncpa [#allocation8], 0  ;;  %s369_s18 = smov [#allocation4]   ;;  %s17_s22 = sshll.u32 %s431_s0, 4  ;;  %s18_s22 = int_to_ptr.hbm [resolvable:$true] %s17_s22 }
   0x3   :  { %s29_s19 = sshll.u32 %s369_s18, 4  ;;  %s370_s23 = smov 128   ;;  %s30_s19 = int_to_ptr.vmem [resolvable:$true] %s29_s19 }
   0x4   :  { %s371_s24 = smov 8   ;;  %s372_s25 = smov [#allocation2]  }
   0x5   :  { %35 = dma.hbm_to_vmem [thread:$0]  %s28_s17, 256, %s30_s19, [#allocation5], %s370_s23, %s370_s23, %s371_s24  }
   0x6   :  { %s19_s26 = sshll.u32 %s372_s25, 4  ;;  %s40_s29 = sshll.u32 %s433_s2, 4  ;;  %s20_s26 = int_to_ptr.vmem [resolvable:$true] %s19_s26  ;;  %s41_s29 = int_to_ptr.hbm [resolvable:$true] %s40_s29 }
   0x7   :  { %22 = dma.hbm_to_vmem [thread:$0]  %s18_s22, 128, %s20_s26, [#allocation3]  }
   0x8   :  { %s54_s5 = sshll.u32 %s434_s3, 4  ;;  %s373_s6 = smov [#allocation6]   ;;  %s55_s5 = int_to_ptr.hbm [resolvable:$true] %s54_s5 }
   0x9   :  { %s42_s7 = sshll.u32 %s373_s6, 4  ;;  %s374_s0 = smov [#allocation7]   ;;  %s43_s7 = int_to_ptr.vmem [resolvable:$true] %s42_s7 }
   0xa   :  { %48 = dma.hbm_to_vmem [thread:$0]  %s41_s29, 1024, %s43_s7, [#allocation5], %s370_s23, %s370_s23, %s371_s24  }
   0xb   :  { %s56_s8 = sshll.u32 %s374_s0, 4  ;;  %s57_s8 = int_to_ptr.vmem [resolvable:$true] %s56_s8 }
   0xc   :  { %59 = dma.hbm_to_vmem [thread:$0]  %s55_s5, 64, %s57_s8, [#allocation8]  }
   0xd   :  { %363 = dma.done.wait [#allocation3], 128  }
   0xe   :  { %364 = vsyncadd [#allocation3], 4294967168 }
   0xf   :  { %365 = dma.done.wait [#allocation5], 1280  }
  0x10   :  { %366 = vsyncadd [#allocation5], 4294966016 }
  0x11   :  { %367 = dma.done.wait [#allocation8], 64  }
  0x12   :  { %368 = vsyncadd [#allocation8], 4294967232  ;;  %v79_v0 = vld [vmem:[#allocation4 + $0x8] sm:$0xff]  ;;  %v78_v1 = vld [vmem:[#allocation4] sm:$0xff]  ;;  %vm81_vm0 = vcmask 130048   ;;  %s375_s2 = smov 64  }
  0x13   :  { %99 = vmatpush.msra.mxu0 %v79_v0  ;;  %v77_v2 = vld [vmem:[#allocation2] sm:$0xff]  ;;  %v415_v3 = vld [vmem:[#allocation7] sm:$0x7]  ;;  %s376_s3 = smov 96   ;;  %v140_v25 = vld [vmem:[#allocation6 + $0x18] sm:$0xff]  ;;  %s377_s9 = smov 32  }
  0x14   :  { %v80_v4 = vperm.slane %v415_v3, 0  ;;  %v139_v26 = vld [vmem:[#allocation6 + $0x10] sm:$0xff]  ;;  %160 = vmatpush.msra.mxu1 %v140_v25  ;;  %v138_v27 = vld [vmem:[#allocation6 + $0x8] sm:$0xff]  ;;  %v137_v28 = vld [vmem:[#allocation6] sm:$0xff]  ;;  %vm145_vm5 = vcmask 261120   ;;  %v141_v32 = vperm.slane %v415_v3, 1 }
  0x15   :  { %100 = vmatpush.msra.mxu0 %v78_v1  ;;  %v204_v53 = vld [vmem:[#allocation6 + $0x38] sm:$0xff]  ;;  %v203_v54 = vld [vmem:[#allocation6 + $0x30] sm:$0xff]  ;;  %v202_v55 = vld [vmem:[#allocation6 + $0x28] sm:$0xff]  ;;  %v205_v60 = vperm.slane %v415_v3, 2 }
  0x16   :  { %239 = vmatmul.msk.f32.vlgmr.msra.gmra.mxu0 %vm81_vm0, %v77_v2  ;;  %161 = vmatpush.msra.mxu1 %v139_v26  ;;  %v201_v56 = vld [vmem:[#allocation6 + $0x20] sm:$0xff] }
  0x17   :  { %223 = vmatpush.msra.mxu2 %v204_v53 }
  0x18   :  { %162 = vmatpush.msra.mxu1 %v138_v27 }
  0x19   :  { %224 = vmatpush.msra.mxu2 %v203_v54 }
  0x1a   :  { %163 = vmatpush.msra.mxu1 %v137_v28 }
  0x1b   :  { %225 = vmatpush.msra.mxu2 %v202_v55 }
  0x1d   :  { %226 = vmatpush.msra.mxu2 %v201_v56 }
  0x93   :  { %v102_v5 = vpop.f32.mrf.mxu0 }
  0x94   :  { %v103_v6 = vadd.f32 %v102_v5, %v80_v4 }
  0x96   :  { %v240_v7 = vmul.f32 -1.442695, %v103_v6 }
  0x98   :  { %255 = vpow2.f32 %v240_v7 }
  0x9e   :  { %v256_v8 = vpop.eup %255 }
  0x9f   :  { %v108_v9 = vadd.f32 1.0, %v256_v8 }
  0xa1   :  { %257 = vrcp.f32 %v108_v9  ;;  %v120_v13 = vand.u32 2147483648, %v108_v9  ;;  %v118_v15 = vand.u32 2147483647, %v108_v9  ;;  %vm114_vm2 = vweird.f32 %v108_v9 }
  0xa3   :  { %v121_v17 = vor.u32 1.1754944e-38, %v120_v13  ;;  %vm119_vm4 = vcmp.eq.f32.partialorder %v118_v15, 8.507059e+37 }
  0xa7   :  { %v258_v10 = vpop.eup %257 }
  0xa8   :  { %v110_v11 = vmul.f32 %v258_v10, %v108_v9  ;;  %vm115_vm1 = vweird.f32 %v258_v10 }
  0xa9   :  { %vm116_vm3 = vmor %vm114_vm2, %vm115_vm1 }
  0xaa   :  { %v111_v12 = vsub.f32 1.0, %v110_v11 }
  0xac   :  { %v112_v14 = vmul.f32 %v258_v10, %v111_v12 }
  0xae   :  { %v113_v16 = vadd.f32 %v258_v10, %v112_v14 }
  0xb0   :  { %v117_v18 = vsel %vm116_vm3, %v258_v10, %v113_v16 }
  0xb1   :  { %v122_v19 = vsel %vm119_vm4, %v121_v17, %v117_v18 }
  0xb2   :  { %v124_v20 = vmul.f32 2.0, %v122_v19 }
  0xb4   :  { %v241_v21 = vadd.f32 -1.0, %v124_v20 }
  0xb6   :  { %127 = vrot.lane.b32.xlu0 %v241_v21, %s375_s2 }
 0x128   :  { %v128_v22 = vpop.permute.xlu0 %127 }
 0x129   :  { %v130_v23 = vmul.f32 %v128_v22, %v122_v19 }
 0x12b   :  { %259 = vtanh.f32 %v130_v23 }
 0x131   :  { %v260_v24 = vpop.eup %259 }
 0x132   :  { %133 = vrot.lane.b32.xlu0 %v260_v24, %s376_s3 }
 0x1a4   :  { %v134_v29 = vpop.permute.xlu0 %133 }
 0x1a5   :  { %v136_v30 = vmul.f32 %v134_v29, %v122_v19 }
 0x1a7   :  { %143 = vrot.lane.b32.xlu1 %v136_v30, %s377_s9 }
 0x219   :  { %v144_v31 = vpop.permute.xlu1 %143 }
 0x21a   :  { %242 = vmatmul.msk.f32.vlgmr.msra.gmra.mxu1 %vm145_vm5, %v144_v31 }
 0x297   :  { %v165_v33 = vpop.f32.mrf.mxu1 }
 0x298   :  { %v166_v34 = vadd.f32 %v165_v33, %v141_v32 }
 0x29a   :  { %v243_v35 = vmul.f32 -1.442695, %v166_v34 }
 0x29c   :  { %261 = vpow2.f32 %v243_v35 }
 0x2a2   :  { %v262_v36 = vpop.eup %261 }
 0x2a3   :  { %v171_v37 = vadd.f32 1.0, %v262_v36 }
 0x2a5   :  { %263 = vrcp.f32 %v171_v37  ;;  %v183_v41 = vand.u32 2147483648, %v171_v37  ;;  %v181_v43 = vand.u32 2147483647, %v171_v37  ;;  %vm177_vm7 = vweird.f32 %v171_v37 }
 0x2a7   :  { %v184_v45 = vor.u32 1.1754944e-38, %v183_v41  ;;  %vm182_vm9 = vcmp.eq.f32.partialorder %v181_v43, 8.507059e+37 }
 0x2ab   :  { %v264_v38 = vpop.eup %263 }
 0x2ac   :  { %v173_v39 = vmul.f32 %v264_v38, %v171_v37  ;;  %vm178_vm6 = vweird.f32 %v264_v38 }
 0x2ad   :  { %vm179_vm8 = vmor %vm177_vm7, %vm178_vm6 }
 0x2ae   :  { %v174_v40 = vsub.f32 1.0, %v173_v39 }
 0x2b0   :  { %v175_v42 = vmul.f32 %v264_v38, %v174_v40 }
 0x2b2   :  { %v176_v44 = vadd.f32 %v264_v38, %v175_v42 }
 0x2b4   :  { %v180_v46 = vsel %vm179_vm8, %v264_v38, %v176_v44 }
 0x2b5   :  { %v185_v47 = vsel %vm182_vm9, %v184_v45, %v180_v46 }
 0x2b6   :  { %v187_v48 = vmul.f32 2.0, %v185_v47 }
 0x2b8   :  { %v244_v49 = vadd.f32 -1.0, %v187_v48 }
 0x2ba   :  { %190 = vrot.lane.b32.xlu1 %v244_v49, %s375_s2 }
 0x32c   :  { %v191_v50 = vpop.permute.xlu1 %190 }
 0x32d   :  { %v193_v51 = vmul.f32 %v191_v50, %v185_v47 }
 0x32f   :  { %265 = vtanh.f32 %v193_v51 }
 0x335   :  { %v266_v52 = vpop.eup %265 }
 0x336   :  { %196 = vrot.lane.b32.xlu2 %v266_v52, %s376_s3 }
 0x390   :  { %v197_v57 = vpop.permute.xlu2 %196 }
 0x391   :  { %v199_v58 = vmul.f32 %v197_v57, %v185_v47 }
 0x393   :  { %207 = vrot.lane.b32.xlu2 %v199_v58, %s377_s9 }
 0x3ed   :  { %v208_v59 = vpop.permute.xlu2 %207 }
 0x3ee   :  { %245 = vmatmul.msk.f32.vlgmr.msra.gmra.mxu2 %vm145_vm5, %v208_v59 }
 0x471   :  { %v228_v61 = vpop.f32.mrf.mxu2 }
 0x472   :  { %v229_v62 = vadd.f32 %v228_v61, %v205_v60 }
 0x474   :  { %231 = vst [vmem:[%s435_s4] sm:$0xff] %v229_v62 }
 0x475   :  { %236 = vsyncpa [#allocation3], 1 }
 0x476   :  { %237 = vsyncpa [#allocation5], 1 }
 0x477   :  { %238 = vsyncpa [#allocation8], 1 }

</bundles_post_ra>
